<compile_context>
chip_gen: v7x
topology: tpu7x:2x2x1
jax: 0.10.0
libtpu: 0.0.40
codegen_flags: <defaults>
</compile_context>

<pallas_src>
import jax
import jax.numpy as jnp
from jax.experimental import pallas as pl
from jax.experimental.pallas import tpu as pltpu


def _temporal_attention_kernel(x_ref, u1_ref, u3l_ref, u2_ref, be_ref, ve_ref,
                               o_ref, rhs2_scr, sig2_scr):
    """One batch block.

    x_ref    : (Bblk, N, F*T)   input dtype (bf16/f32), lane-dense
    u1_ref   : (N, 1)    f32
    u3l_ref  : (1, F*T)  f32    (U3[f] repeated T times along lanes)
    u2_ref   : (F, N)    f32
    be_ref   : (T, T)    f32
    ve_ref   : (T, T)    f32
    o_ref    : (1, T, Bblk*T) f32   lane-dense output tile
    rhs2_scr : (N, Bblk*T) f32 VMEM scratch (batch folded into lanes)
    sig2_scr : (T, Bblk*T) f32 VMEM scratch (batch folded into lanes)
    """
    f32 = jnp.float32
    bblk, _, ft = x_ref.shape
    t_len = o_ref.shape[1]
    f_ch = ft // t_len

    xb = x_ref[...].astype(f32)                         # (Bblk, N, F*T), upcast once
    u1 = u1_ref[...]                                    # (N, 1)
    u3l = u3l_ref[...]                                  # (1, F*T)
    u2 = u2_ref[...]                                    # (F, N)
    be = be_ref[...]                                    # (T, T)
    ve = ve_ref[...]                                    # (T, T)

    # tmp_flat[b, f*T + t1] = sum_n U1[n] * x[b, n, f, t1]     ("x.permute @ U1")
    tmp_flat = jnp.sum(xb * u1[None], axis=1)           # (Bblk, F*T)
    tmp_cols = jnp.transpose(tmp_flat)                  # (F*T, Bblk)  (single 2-D transpose)

    # rhs[b, n, t2] = sum_f U3[f] * x[b, n, f, t2]             ("U3 @ x"), unrolled over F
    rhs_all = None
    for f in range(f_ch):
        sl = slice(f * t_len, (f + 1) * t_len)
        piece = xb[:, :, sl] * u3l[:, sl][None]                         # (Bblk, N, T)
        rhs_all = piece if rhs_all is None else rhs_all + piece

    # Fold batch into the lane dim: rhs2[n, b*T + t2] = rhs[b, n, t2]
    for b in range(bblk):
        rhs2_scr[:, b * t_len:(b + 1) * t_len] = rhs_all[b]

    # Wide MXU matmul: W2[f, b*T+t2] = sum_n U2[f, n] * rhs[b, n, t2]
    w2 = jnp.dot(u2, rhs2_scr[...], preferred_element_type=f32)         # (F, Bblk*T)

    # product[b, t1, t2] = sum_f tmp[b, t1, f] * W2[f, b*T+t2]
    # K = F is tiny -> unrolled VPU rank-1 FMAs instead of an MXU round trip.
    for b in range(bblk):
        prod = None
        for f in range(f_ch):
            t_col = tmp_cols[f * t_len:(f + 1) * t_len, b:b + 1]        # (T, 1)
            w_row = w2[f:f + 1, b * t_len:(b + 1) * t_len]              # (1, T)
            term = t_col * w_row                                        # (T, T)
            prod = term if prod is None else prod + term
        sig2_scr[:, b * t_len:(b + 1) * t_len] = jax.nn.sigmoid(prod + be)

    # Wide MXU matmul: E2[q, b*T+t2] = sum_s Ve[q, s] * sigmoid(product + be)[b, s, t2]
    e2 = jnp.dot(ve, sig2_scr[...], preferred_element_type=f32)         # (T, Bblk*T)

    # softmax over dim=1 of (B, T, T) == rows (axis 0) of the folded (T, Bblk*T) tile
    m = jnp.max(e2, axis=0, keepdims=True)
    ex = jnp.exp(e2 - m)
    denom = jnp.sum(ex, axis=0, keepdims=True)
    o_ref[0, :, :] = (ex * pl.reciprocal(denom, approx=True)).astype(o_ref.dtype)


def _pick_batch_block(batch, n_vert, f_ch, t_len, x_itemsize):
    """Batch-block size from the VMEM budget; keep >= 2 grid steps for dual-TC chips."""
    try:
        info = pltpu.get_tpu_info()
        vmem_cap = int(getattr(info, "vmem_capacity_bytes", 0)) or (64 * 2 ** 20)
    except Exception:
        vmem_cap = 64 * 2 ** 20                      # conservative (v7x-class) default
    vmem_limit = min(int(vmem_cap * 3 // 4), 96 * 2 ** 20)
    # Conservative per-batch VMEM cost: double-buffered x block, in-kernel f32
    # temporaries, folded scratch and the output tile.
    per_batch = (n_vert * f_ch * t_len * (2 * x_itemsize + 12)
                 + 8 * t_len * (n_vert + 4 * t_len))
    budget = vmem_limit // 2
    bblk = max(1, min(batch, budget // max(per_batch, 1)))
    if batch >= 2:                                   # >= 2 grid steps (v7x: 2 TensorCores)
        bblk = min(bblk, -(-batch // 2))
    return int(bblk), int(vmem_limit)


def temporal_attention(x, U1, U2, U3, be, Ve):
    """ASTGCN temporal attention.  x: (B, N, F, T), any float dtype (bf16 recommended:
    half the DMA bytes; it is upcast to f32 in-kernel, matching x.float()).
    Returns the softmax-normalized attention (B, T, T), float32."""
    B, N, F, T = x.shape
    f32 = jnp.float32

    bblk, vmem_limit = _pick_batch_block(B, N, F, T, jnp.dtype(x.dtype).itemsize)
    grid_n = -(-B // bblk)
    b_pad = grid_n * bblk
    if b_pad != B:
        # Pad with zeros; padded batches produce finite values that are sliced away.
        x = jnp.pad(x, ((0, b_pad - B), (0, 0), (0, 0), (0, 0)))

    # Lane-dense x layout: pure reshape (no HBM transpose), dtype preserved.
    x_k = x.reshape(b_pad, N, F * T)

    u1 = U1.astype(f32).reshape(N, 1)
    u2 = U2.astype(f32)
    u3l = jnp.repeat(U3.astype(f32), T).reshape(1, F * T)   # u3l[0, f*T+t] = U3[f]
    be2 = be.astype(f32).reshape(T, T)
    ve = Ve.astype(f32)

    grid_spec = pltpu.PrefetchScalarGridSpec(
        num_scalar_prefetch=0,
        grid=(grid_n,),
        in_specs=[
            pl.BlockSpec((bblk, N, F * T), lambda i: (i, 0, 0)),
            pl.BlockSpec((N, 1), lambda i: (0, 0)),
            pl.BlockSpec((1, F * T), lambda i: (0, 0)),
            pl.BlockSpec((F, N), lambda i: (0, 0)),
            pl.BlockSpec((T, T), lambda i: (0, 0)),
            pl.BlockSpec((T, T), lambda i: (0, 0)),
        ],
        out_specs=pl.BlockSpec((1, T, bblk * T), lambda i: (i, 0, 0)),
        scratch_shapes=[
            pltpu.VMEM((N, bblk * T), f32),
            pltpu.VMEM((T, bblk * T), f32),
        ],
    )

    out_folded = pl.pallas_call(
        _temporal_attention_kernel,
        out_shape=jax.ShapeDtypeStruct((grid_n, T, bblk * T), f32),
        grid_spec=grid_spec,
        compiler_params=pltpu.CompilerParams(
            dimension_semantics=("parallel",),
            vmem_limit_bytes=vmem_limit,
        ),
    )(x_k, u1, u3l, u2, be2, ve)

    # Unfold (grid, T, bblk*T) -> (B, T, T): wrapper-side layout plumbing only.
    out = out_folded.reshape(grid_n, T, bblk, T).transpose(0, 2, 1, 3).reshape(b_pad, T, T)
    return out[:B]


def temporal_attention_reference(x, U1, U2, U3, be, Ve):
    """Pure-JAX mirror of the PyTorch forward (full-precision matmuls)."""
    hp = jax.lax.Precision.HIGHEST
    x = x.astype(jnp.float32)
    lhs = jnp.matmul(jnp.matmul(jnp.transpose(x, (0, 3, 2, 1)), U1, precision=hp),
                     U2, precision=hp)                                   # (B, T, N)
    rhs = jnp.einsum('f,bnft->bnt', U3, x, precision=hp)                 # (B, N, T)
    product = jnp.matmul(lhs, rhs, precision=hp)                         # (B, T, T)
    E = jnp.matmul(Ve, jax.nn.sigmoid(product + be), precision=hp)       # (B, T, T)
    return jax.nn.softmax(E, axis=1)


if __name__ == "__main__":
    # Shapes implied by the module: batch=2, vertices=16, channels=4, timesteps=8
    B, N, F, T = 2, 16, 4, 8
    key = jax.random.PRNGKey(0)
    kx, k1, k2, k3, kb, kv = jax.random.split(key, 6)

    x = jax.random.normal(kx, (B, N, F, T), dtype=jnp.float32)
    # torch.rand -> uniform [0, 1)
    U1 = jax.random.uniform(k1, (N,), dtype=jnp.float32)
    U2 = jax.random.uniform(k2, (F, N), dtype=jnp.float32)
    U3 = jax.random.uniform(k3, (F,), dtype=jnp.float32)
    be = jax.random.uniform(kb, (1, T, T), dtype=jnp.float32)
    Ve = jax.random.uniform(kv, (T, T), dtype=jnp.float32)

    # bf16 activations: halves the x DMA; in-kernel upcast reproduces x.float().
    x_bf16 = x.astype(jnp.bfloat16)

    out = jax.block_until_ready(temporal_attention(x_bf16, U1, U2, U3, be, Ve))
    ref = temporal_attention_reference(x_bf16.astype(jnp.float32), U1, U2, U3, be, Ve)

    assert out.shape == (B, T, T)
    max_err = float(jnp.max(jnp.abs(out - ref)))
    assert jnp.allclose(out, ref, atol=2e-3, rtol=2e-2), f"mismatch vs reference: {max_err}"

    print("KERNEL_OK")
</pallas_src>

<mosaic_0001>
module attributes {stable_mosaic.version = 11 : i64} {
  func.func @_temporal_attention_kernel(%arg0: i32, %arg1: memref<1x16x32xbf16, #tpu.memory_space<vmem>>, %arg2: memref<16x1xf32, #tpu.memory_space<vmem>>, %arg3: memref<1x32xf32, #tpu.memory_space<vmem>>, %arg4: memref<4x16xf32, #tpu.memory_space<vmem>>, %arg5: memref<8x8xf32, #tpu.memory_space<vmem>>, %arg6: memref<8x8xf32, #tpu.memory_space<vmem>>, %arg7: memref<1x8x8xf32, #tpu.memory_space<vmem>>, %arg8: memref<16x8xf32, #tpu.memory_space<vmem>>, %arg9: memref<8x8xf32, #tpu.memory_space<vmem>>) attributes {dimension_semantics = [#tpu.dimension_semantics<parallel>], iteration_bounds = array<i64: 2>, scalar_prefetch = 0 : i64, scratch_operands = 2 : i64, tpu.core_type = #tpu.core_type<tc>, window_params = [{transform_indices = @transform_0, window_bounds = array<i64: 1, 16, 32>}, {pipeline_mode = #tpu.pipeline_mode<synchronous>, transform_indices = @transform_1, window_bounds = array<i64: 16, 1>}, {pipeline_mode = #tpu.pipeline_mode<synchronous>, transform_indices = @transform_2, window_bounds = array<i64: 1, 32>}, {pipeline_mode = #tpu.pipeline_mode<synchronous>, transform_indices = @transform_3, window_bounds = array<i64: 4, 16>}, {pipeline_mode = #tpu.pipeline_mode<synchronous>, transform_indices = @transform_4, window_bounds = array<i64: 8, 8>}, {pipeline_mode = #tpu.pipeline_mode<synchronous>, transform_indices = @transform_5, window_bounds = array<i64: 8, 8>}, {transform_indices = @transform_6, window_bounds = array<i64: 1, 8, 8>}]} {
    %c0 = arith.constant 0 : index
    %c0_0 = arith.constant 0 : index
    %c0_1 = arith.constant 0 : index
    %0 = vector.load %arg1[%c0, %c0_0, %c0_1] : memref<1x16x32xbf16, #tpu.memory_space<vmem>>, vector<1x16x32xbf16>
    %1 = arith.extf %0 : vector<1x16x32xbf16> to vector<1x16x32xf32>
    %c0_2 = arith.constant 0 : index
    %c0_3 = arith.constant 0 : index
    %2 = vector.load %arg2[%c0_2, %c0_3] : memref<16x1xf32, #tpu.memory_space<vmem>>, vector<16x1xf32>
    %c0_4 = arith.constant 0 : index
    %c0_5 = arith.constant 0 : index
    %3 = vector.load %arg3[%c0_4, %c0_5] : memref<1x32xf32, #tpu.memory_space<vmem>>, vector<1x32xf32>
    %c0_6 = arith.constant 0 : index
    %c0_7 = arith.constant 0 : index
    %4 = vector.load %arg4[%c0_6, %c0_7] : memref<4x16xf32, #tpu.memory_space<vmem>>, vector<4x16xf32>
    %c0_8 = arith.constant 0 : index
    %c0_9 = arith.constant 0 : index
    %5 = vector.load %arg5[%c0_8, %c0_9] : memref<8x8xf32, #tpu.memory_space<vmem>>, vector<8x8xf32>
    %c0_10 = arith.constant 0 : index
    %c0_11 = arith.constant 0 : index
    %6 = vector.load %arg6[%c0_10, %c0_11] : memref<8x8xf32, #tpu.memory_space<vmem>>, vector<8x8xf32>
    %7 = vector.shape_cast %2 : vector<16x1xf32> to vector<1x16x1xf32>
    %8 = vector.broadcast %7 : vector<1x16x1xf32> to vector<1x16x32xf32>
    %9 = arith.mulf %1, %8 : vector<1x16x32xf32>
    %cst = arith.constant dense<0.000000e+00> : vector<1x32xf32>
    %10 = vector.multi_reduction <add>, %9, %cst [1] : vector<1x16x32xf32> to vector<1x32xf32>
    %11 = tpu.transpose %10, [1, 0] : vector<1x32xf32> -> vector<32x1xf32>
    %12 = vector.extract_strided_slice %1 {offsets = [0, 0, 0], sizes = [1, 16, 8], strides = [1, 1, 1]} : vector<1x16x32xf32> to vector<1x16x8xf32>
    %13 = vector.extract_strided_slice %3 {offsets = [0, 0], sizes = [1, 8], strides = [1, 1]} : vector<1x32xf32> to vector<1x8xf32>
    %14 = vector.shape_cast %13 : vector<1x8xf32> to vector<1x1x8xf32>
    %15 = vector.broadcast %14 : vector<1x1x8xf32> to vector<1x16x8xf32>
    %16 = arith.mulf %12, %15 : vector<1x16x8xf32>
    %17 = vector.extract_strided_slice %1 {offsets = [0, 0, 8], sizes = [1, 16, 8], strides = [1, 1, 1]} : vector<1x16x32xf32> to vector<1x16x8xf32>
    %18 = vector.extract_strided_slice %3 {offsets = [0, 8], sizes = [1, 8], strides = [1, 1]} : vector<1x32xf32> to vector<1x8xf32>
    %19 = vector.shape_cast %18 : vector<1x8xf32> to vector<1x1x8xf32>
    %20 = vector.broadcast %19 : vector<1x1x8xf32> to vector<1x16x8xf32>
    %21 = arith.mulf %17, %20 : vector<1x16x8xf32>
    %22 = arith.addf %16, %21 : vector<1x16x8xf32>
    %23 = vector.extract_strided_slice %1 {offsets = [0, 0, 16], sizes = [1, 16, 8], strides = [1, 1, 1]} : vector<1x16x32xf32> to vector<1x16x8xf32>
    %24 = vector.extract_strided_slice %3 {offsets = [0, 16], sizes = [1, 8], strides = [1, 1]} : vector<1x32xf32> to vector<1x8xf32>
    %25 = vector.shape_cast %24 : vector<1x8xf32> to vector<1x1x8xf32>
    %26 = vector.broadcast %25 : vector<1x1x8xf32> to vector<1x16x8xf32>
    %27 = arith.mulf %23, %26 : vector<1x16x8xf32>
    %28 = arith.addf %22, %27 : vector<1x16x8xf32>
    %29 = vector.extract_strided_slice %1 {offsets = [0, 0, 24], sizes = [1, 16, 8], strides = [1, 1, 1]} : vector<1x16x32xf32> to vector<1x16x8xf32>
    %30 = vector.extract_strided_slice %3 {offsets = [0, 24], sizes = [1, 8], strides = [1, 1]} : vector<1x32xf32> to vector<1x8xf32>
    %31 = vector.shape_cast %30 : vector<1x8xf32> to vector<1x1x8xf32>
    %32 = vector.broadcast %31 : vector<1x1x8xf32> to vector<1x16x8xf32>
    %33 = arith.mulf %29, %32 : vector<1x16x8xf32>
    %34 = arith.addf %28, %33 : vector<1x16x8xf32>
    %35 = vector.shape_cast %34 : vector<1x16x8xf32> to vector<16x8xf32>
    %c0_12 = arith.constant 0 : index
    %c0_13 = arith.constant 0 : index
    %36 = vector.load %arg8[%c0_12, %c0_13] : memref<16x8xf32, #tpu.memory_space<vmem>>, vector<16x8xf32>
    tpu.vector_store %arg8[%c0_12, %c0_13], %35 {strides = array<i32>} : memref<16x8xf32, #tpu.memory_space<vmem>>, vector<16x8xf32>,
    %c0_14 = arith.constant 0 : index
    %c0_15 = arith.constant 0 : index
    %37 = vector.load %arg8[%c0_14, %c0_15] : memref<16x8xf32, #tpu.memory_space<vmem>>, vector<16x8xf32>
    %cst_16 = arith.constant dense<0.000000e+00> : vector<4x8xf32>
    %38 = tpu.matmul %4, %37, %cst_16 {dimension_numbers = #tpu.dot_dimension_numbers<[1], [0], [0], [1], [0, 0, 1, 1], [], []>} : vector<4x16xf32>, vector<16x8xf32>, vector<4x8xf32> -> vector<4x8xf32>
    %39 = vector.extract_strided_slice %11 {offsets = [0, 0], sizes = [8, 1], strides = [1, 1]} : vector<32x1xf32> to vector<8x1xf32>
    %40 = vector.extract_strided_slice %38 {offsets = [0, 0], sizes = [1, 8], strides = [1, 1]} : vector<4x8xf32> to vector<1x8xf32>
    %41 = vector.broadcast %39 : vector<8x1xf32> to vector<8x8xf32>
    %42 = vector.broadcast %40 : vector<1x8xf32> to vector<8x8xf32>
    %43 = arith.mulf %41, %42 : vector<8x8xf32>
    %44 = vector.extract_strided_slice %11 {offsets = [8, 0], sizes = [8, 1], strides = [1, 1]} : vector<32x1xf32> to vector<8x1xf32>
    %45 = vector.extract_strided_slice %38 {offsets = [1, 0], sizes = [1, 8], strides = [1, 1]} : vector<4x8xf32> to vector<1x8xf32>
    %46 = vector.broadcast %44 : vector<8x1xf32> to vector<8x8xf32>
    %47 = vector.broadcast %45 : vector<1x8xf32> to vector<8x8xf32>
    %48 = arith.mulf %46, %47 : vector<8x8xf32>
    %49 = arith.addf %43, %48 : vector<8x8xf32>
    %50 = vector.extract_strided_slice %11 {offsets = [16, 0], sizes = [8, 1], strides = [1, 1]} : vector<32x1xf32> to vector<8x1xf32>
    %51 = vector.extract_strided_slice %38 {offsets = [2, 0], sizes = [1, 8], strides = [1, 1]} : vector<4x8xf32> to vector<1x8xf32>
    %52 = vector.broadcast %50 : vector<8x1xf32> to vector<8x8xf32>
    %53 = vector.broadcast %51 : vector<1x8xf32> to vector<8x8xf32>
    %54 = arith.mulf %52, %53 : vector<8x8xf32>
    %55 = arith.addf %49, %54 : vector<8x8xf32>
    %56 = vector.extract_strided_slice %11 {offsets = [24, 0], sizes = [8, 1], strides = [1, 1]} : vector<32x1xf32> to vector<8x1xf32>
    %57 = vector.extract_strided_slice %38 {offsets = [3, 0], sizes = [1, 8], strides = [1, 1]} : vector<4x8xf32> to vector<1x8xf32>
    %58 = vector.broadcast %56 : vector<8x1xf32> to vector<8x8xf32>
    %59 = vector.broadcast %57 : vector<1x8xf32> to vector<8x8xf32>
    %60 = arith.mulf %58, %59 : vector<8x8xf32>
    %61 = arith.addf %55, %60 : vector<8x8xf32>
    %62 = arith.addf %61, %5 : vector<8x8xf32>
    %63 = arith.negf %62 : vector<8x8xf32>
    %64 = math.exp %63 : vector<8x8xf32>
    %cst_17 = arith.constant 1.000000e+00 : f32
    %65 = vector.broadcast %cst_17 : f32 to vector<8x8xf32>
    %66 = arith.addf %65, %64 : vector<8x8xf32>
    %67 = arith.divf %65, %66 : vector<8x8xf32>
    %c0_18 = arith.constant 0 : index
    %c0_19 = arith.constant 0 : index
    %68 = vector.load %arg9[%c0_18, %c0_19] : memref<8x8xf32, #tpu.memory_space<vmem>>, vector<8x8xf32>
    tpu.vector_store %arg9[%c0_18, %c0_19], %67 {strides = array<i32>} : memref<8x8xf32, #tpu.memory_space<vmem>>, vector<8x8xf32>,
    %c0_20 = arith.constant 0 : index
    %c0_21 = arith.constant 0 : index
    %69 = vector.load %arg9[%c0_20, %c0_21] : memref<8x8xf32, #tpu.memory_space<vmem>>, vector<8x8xf32>
    %cst_22 = arith.constant dense<0.000000e+00> : vector<8x8xf32>
    %70 = tpu.matmul %6, %69, %cst_22 {dimension_numbers = #tpu.dot_dimension_numbers<[1], [0], [0], [1], [0, 0, 1, 1], [], []>} : vector<8x8xf32>, vector<8x8xf32>, vector<8x8xf32> -> vector<8x8xf32>
    %cst_23 = arith.constant dense<0xFF800000> : vector<8xf32>
    %71 = vector.multi_reduction <maximumf>, %70, %cst_23 [0] : vector<8x8xf32> to vector<8xf32>
    %72 = vector.shape_cast %71 : vector<8xf32> to vector<1x8xf32>
    %73 = vector.broadcast %72 : vector<1x8xf32> to vector<8x8xf32>
    %74 = arith.subf %70, %73 : vector<8x8xf32>
    %75 = math.exp %74 : vector<8x8xf32>
    %cst_24 = arith.constant dense<0.000000e+00> : vector<8xf32>
    %76 = vector.multi_reduction <add>, %75, %cst_24 [0] : vector<8x8xf32> to vector<8xf32>
    %77 = vector.shape_cast %76 : vector<8xf32> to vector<1x8xf32>
    %78 = tpu.reciprocal %77 {approx = true} : vector<1x8xf32> -> vector<1x8xf32>
    %79 = vector.broadcast %78 : vector<1x8xf32> to vector<8x8xf32>
    %80 = arith.mulf %75, %79 : vector<8x8xf32>
    %c0_25 = arith.constant 0 : index
    %c0_26 = arith.constant 0 : index
    %c0_27 = arith.constant 0 : index
    %81 = vector.load %arg7[%c0_25, %c0_26, %c0_27] : memref<1x8x8xf32, #tpu.memory_space<vmem>>, vector<1x8x8xf32>
    %82 = vector.shape_cast %81 : vector<1x8x8xf32> to vector<8x8xf32>
    %83 = vector.shape_cast %80 : vector<8x8xf32> to vector<1x8x8xf32>
    tpu.vector_store %arg7[%c0_25, %c0_26, %c0_27], %83 {strides = array<i32>} : memref<1x8x8xf32, #tpu.memory_space<vmem>>, vector<1x8x8xf32>,
    return
  }
  func.func @transform_0(%arg0: i32) -> (i32, i32, i32) {
    %c0_i32 = arith.constant 0 : i32
    %c0_i32_0 = arith.constant 0 : i32
    %c0_i32_1 = arith.constant 0 : i32
    return %arg0, %c0_i32, %c0_i32_0 : i32, i32, i32
  }
  func.func @transform_1(%arg0: i32) -> (i32, i32) {
    %c0_i32 = arith.constant 0 : i32
    %c0_i32_0 = arith.constant 0 : i32
    %c0_i32_1 = arith.constant 0 : i32
    return %c0_i32, %c0_i32_0 : i32, i32
  }
  func.func @transform_2(%arg0: i32) -> (i32, i32) {
    %c0_i32 = arith.constant 0 : i32
    %c0_i32_0 = arith.constant 0 : i32
    %c0_i32_1 = arith.constant 0 : i32
    return %c0_i32, %c0_i32_0 : i32, i32
  }
  func.func @transform_3(%arg0: i32) -> (i32, i32) {
    %c0_i32 = arith.constant 0 : i32
    %c0_i32_0 = arith.constant 0 : i32
    %c0_i32_1 = arith.constant 0 : i32
    return %c0_i32, %c0_i32_0 : i32, i32
  }
  func.func @transform_4(%arg0: i32) -> (i32, i32) {
    %c0_i32 = arith.constant 0 : i32
    %c0_i32_0 = arith.constant 0 : i32
    %c0_i32_1 = arith.constant 0 : i32
    return %c0_i32, %c0_i32_0 : i32, i32
  }
  func.func @transform_5(%arg0: i32) -> (i32, i32) {
    %c0_i32 = arith.constant 0 : i32
    %c0_i32_0 = arith.constant 0 : i32
    %c0_i32_1 = arith.constant 0 : i32
    return %c0_i32, %c0_i32_0 : i32, i32
  }
  func.func @transform_6(%arg0: i32) -> (i32, i32, i32) {
    %c0_i32 = arith.constant 0 : i32
    %c0_i32_0 = arith.constant 0 : i32
    %c0_i32_1 = arith.constant 0 : i32
    return %arg0, %c0_i32, %c0_i32_0 : i32, i32, i32
  }
}

</mosaic_0001>

<bundles_post_ra>
// kernel: tpu_custom_call.1
= control target key start
LH: loop header
LB: loop body
LE: loop exit
PB: predicated region body
PF: predicated region fallthrough
CT: control target
= control target key end

     0   :  { %11 = vsyncpa [#allocation5], 0  ;;  %s1178_s0 = inlined_call_operand.vmem [shape: bf16[2,16,32], index: 0, kind: input, shape index: {}]   ;;  %s1179_s1 = inlined_call_operand.vmem [shape: f32[16,1], index: 1, kind: input, shape index: {}]   ;;  %s1180_s2 = inlined_call_operand.hbm [shape: f32[1,32], index: 2, kind: input, shape index: {}]   ;;  %s1181_s3 = inlined_call_operand.hbm [shape: f32[4,16], index: 3, kind: input, shape index: {}]   ;;  %s1182_s4 = inlined_call_operand.vmem [shape: f32[8,8], index: 4, kind: input, shape index: {}]   ;;  %s1183_s5 = inlined_call_operand.vmem [shape: f32[8,8], index: 5, kind: input, shape index: {}]   ;;  %s1184_s6 = inlined_call_operand.hbm [shape: f32[2,8,8], index: 6, kind: output, shape index: {}]  }
   0x1   :  { %12 = vsyncpa [#allocation8], 0 }
   0x2   :  { %13 = vsyncpa [#allocation6], 0 }
   0x3   :  { %15 = vsyncpa [#allocation6 + $0x1], 0  ;;  %s987_s21 = smov 0   ;;  %s989_s22 = smov 0  }
   0x4   :  { %s991_s23 = smov 0   ;;  %s993_s24 = smov 0  }
   0x5 LB: > { %s1008_s25 = sadd.s32 4294967295, %s940_s24   ;;  %s693_s26 = sadd.s32 4294967294, %s940_s24   ;;  %s940_s24 = sphi %s993_s24, %s1202_s24   ;;  %s936_s23 = sphi %s991_s23, %s1201_s23   ;;  %s932_s22 = sphi %s989_s22, %s1200_s22   ;;  %s928_s21 = sphi %s987_s21, %s1199_s21  }
   0x6   : > { %s1012_s27 = sadd.s32 1, %s940_s24   ;;  %s159_s28 = sadd.s32 1, %s936_s23 }
   0x7   : > { %s156_s29 = ssub.s32 %s940_s24, %s1012_s27  ;;  %p169_p0 = scmp.ne.s32.totalorder %s936_s23, %s932_s22 }
   0x8   : > { %p157_p1 = scmp.eq.s32.totalorder %s156_s29, 0  ;;  %p170_p2 = scmp.eq.s32.totalorder %s1008_s25, 1 }
   0x9   : > { %p175_p3 = scmp.ne.s32.totalorder %s932_s22, %s928_s21  ;;  %p176_p4 = scmp.eq.s32.totalorder %s693_s26, 1 }
   0xa   : > { %s1023_s30 = scalar_select %p157_p1, %s936_s23, %s159_s28  }
   0xb   : > { %p1025_p5 = por %p170_p2, %p169_p0  ;;  %p1029_p6 = por %p176_p4, %p175_p3 }
   0xc   : > { %p694_p7 = scmp.ge.s32.totalorder %s940_s24, 1  ;;  %p183_p8 = scmp.lt.s32.totalorder %s940_s24, 3 }
   0xd   : > { %s1188_s7 = scalar_select %p1025_p5, 1, 0 }
   0xe   : > { %s1189_s8 = scalar_select %p1029_p6, 1, 0 }
   0xf   : > { %p1185_p9 = scmp.eq.s32.totalorder %s1008_s25, 0  ;;  %p1036_p10 = pnand %p694_p7, %p183_p8 }
  0x10   : > { %s942_s10 = smov [#allocation4]   ;;  %s943_s12 = smov [#allocation7]  }
  0x11   : > { %s1190_s9 = scalar_select %p1036_p10, 1, 0 }
  0x12   : > { %s199_s11 = sshll.u32 %s942_s10, 4  ;;  %p747_p11 = pneg %p1036_p10  ;;  %s200_s11 = int_to_ptr.vmem [resolvable:$true] %s199_s11 }
  0x13   : > { %s210_s13 = sshll.u32 %s943_s12, 4  ;;  %s814_s17 = scalar_lea.hbm %s1180_s2, 16  ;;  %s1048_s13 = int_to_ptr.vmem [resolvable:$true] %s210_s13 }
  0x14   : > { %p1044_p12 = pnand %p1185_p9, %p747_p11  ;;  %p815_p13 = scmp.ne.s32.totalorder %s1180_s2, %s814_s17 }
  0x15   : > { %p821_p3 = scmp.lt.u32.totalorder %s814_s17, %s1180_s2 }
  0x16   : > { %p816_p0 = pneg %p1044_p12 }
  0x18   : > { %p817_p1 = pnand %p816_p0, %p815_p13 }
  0x1a   : > { %p818_p2 = pneg %p817_p1 }
  0x1c   : > { %p823_p4 = pnand %p821_p3, %p818_p2 }
  0x1e   : > { %826 = shalt.err (!%p823_p4)
}
  0x1f   : > { %s827_s28 = scalar_lea.vmem %s200_s11, 16  ;;  %s834_s29 = scalar_lea.vmem %s200_s11, 32 }
  0x20   : > { %p828_p7 = scmp.ne.s32.totalorder %s200_s11, %s827_s28  ;;  %p835_p9 = scmp.lt.s32.totalorder %s200_s11, %s200_s11 }
  0x21   : > { %p836_p6 = scmp.lt.s32.totalorder %s834_s29, %s827_s28 }
  0x22   : > { %p830_p8 = pnand %p828_p7, %p816_p0 }
  0x23   : > { %p837_p5 = por %p836_p6, %p835_p9 }
  0x24   : > { %p831_p11 = pneg %p830_p8 }
  0x26   : > { %p838_p10 = pnand %p837_p5, %p831_p11 }
  0x28   : > { %841 = shalt.err (!%p838_p10)
}
  0x29   : > { %750 = dma.hbm_to_vmem [thread:$0]  (!%p1044_p12), %s1180_s2, 16, %s200_s11, [#allocation5]  }
  0x2a   : > { %s842_s17 = scalar_lea.hbm %s1181_s3, 64 }
  0x2b   : > { %p843_p13 = scmp.ne.s32.totalorder %s1181_s3, %s842_s17  ;;  %p849_p9 = scmp.lt.u32.totalorder %s842_s17, %s1181_s3 }
  0x2d   : > { %p845_p6 = pnand %p843_p13, %p816_p0 }
  0x2f   : > { %p846_p5 = pneg %p845_p6 }
  0x31   : > { %p851_p10 = pnand %p849_p9, %p846_p5 }
  0x33   : > { %854 = shalt.err (!%p851_p10)
}
  0x34   : > { %s855_s11 = scalar_lea.vmem %s1048_s13, 64  ;;  %p863_p4 = scmp.lt.s32.totalorder %s1048_s13, %s1048_s13 }
  0x35   : > { %p856_p1 = scmp.ne.s32.totalorder %s1048_s13, %s855_s11  ;;  %p864_p7 = scmp.lt.s32.totalorder %s855_s11, %s855_s11 }
  0x37   : > { %p858_p2 = pnand %p856_p1, %p816_p0  ;;  %p865_p8 = por %p864_p7, %p863_p4 }
  0x39   : > { %p859_p3 = pneg %p858_p2 }
  0x3b   : > { %p866_p11 = pnand %p865_p8, %p859_p3 }
  0x3d   : > { %869 = shalt.err (!%p866_p11)
}
  0x3e   : > { %753 = dma.hbm_to_vmem [thread:$0]  (!%p1044_p12), %s1181_s3, 64, %s1048_s13, [#allocation8]  }
  0x3f   : > { %p1192_p13 = scmp.ne.s32.totalorder %s1190_s9, 0 }
  0x40   : > { %p1193_p6 = scmp.eq.s32.totalorder (!%p1192_p13), %s1008_s25, 0 }
  0x41   : > { %237 = sbr.rel (%p1192_p13) target bundleno = 835 (0x343), region = 44 }
  0x48   : > { %915 = dma.done.wait (%p1193_p6), [#allocation5], 16   ;;  %p1194_p0 = pmov %p1193_p6 }
  0x4a   : > { %917 = vsyncadd (%p1194_p0), [#allocation5], 4294967280  ;;  %p1195_p5 = pmov %p1194_p0 }
  0x4b   : > { %p1196_p9 = pmov %p1194_p0 }
  0x4c   : > { %919 = dma.done.wait (%p1195_p5), [#allocation8], 64  }
  0x4d   : > { %921 = vsyncadd (%p1196_p9), [#allocation8], 4294967232  ;;  %p271_p10 = scmp.lt.s32.totalorder %s1008_s25, 1  ;;  %v944_v0 = vmov 0   ;;  %v704_v2 = vld [vmem:[#allocation4] ss:$0 sm:$0xff]  ;;  %v458_v46 = vlaneseq }
  0x4e   : > { %805 = vset.pattern.permute.xlu1 %v944_v0  ;;  %804 = vset.pattern.permute.xlu0 %v944_v0  ;;  %v945_v6 = vmov 0.0|0.0   ;;  %s946_s15 = smov 112   ;;  %s947_s16 = smov 120   ;;  %v281_v8 = vld [vmem:[%s1179_s1 + $0x8] sm:$0xff]  ;;  %v280_v9 = vld [vmem:[%s1179_s1] sm:$0xff]  ;;  %vm949_vm0 = vmmov 0  }
  0x4f   : > { %s272_s9 = scalar_select %p271_p10, %s1008_s25, 1  ;;  %734 = vmatprep.subr.bf16.mxu0 %v945_v6  ;;  %v950_v10 = vmov 0.0   ;;  %vm374_vm1 = vcmask 64512   ;;  %v283_v26 = vld [vmem:[#allocation7] sm:$0xf]  ;;  %vm379_vm2 = vcmask 130048  }
  0x50   : > { %s948_s17 = smov 104   ;;  %726 = vmatprep.mubr.msk.f32.mxu0 %vm949_vm0, %v950_v10  ;;  %729 = vmatprep.subr.mxu1 %v950_v10  ;;  %vm298_vm3 = vcmask 261120   ;;  %v459_v47 = vshrl.u32 %v458_v46, 7  ;;  %s709_s10 = sshll.u32 %s1008_s25, 7 }
  0x51   : > { %s712_s13 = sshll.u32 %s272_s9, 3  ;;  %731 = vmatprep.mubr.msk.f32.mxu1 %vm949_vm0, %v950_v10  ;;  %s1135_s18 = scalar_lea.hbm %s1184_s6, %s709_s10 }
  0x52   : > { %s275_s12 = scalar_lea.vmem %s1178_s0, %s712_s13  ;;  %v470_v48 = vsub.s32 1, %v459_v47  ;;  %v460_v50 = vsub.s32 0, %v459_v47  ;;  %v481_v51 = vsub.s32 2, %v459_v47  ;;  %v492_v57 = vsub.s32 3, %v459_v47  ;;  %s268_s13 = sand.u32 1, %s932_s22  }
  0x53   : > { %v714_v1 = vld [vmem:[%s275_s12] sm:$0xff]   ;;  %s701_s14 = sshll.u32 %s268_s13, 3  ;;  %s599_s19 = scalar_lea.sflag [#allocation6], %s268_s13 }
  0x54   : > { %v715_v3 = vunpack.c.l.bf16 %v714_v1  ;;  %v716_v4 = vunpack.c.h.bf16 %v714_v1  ;;  %s270_s12 = scalar_lea.vmem [#allocation9], %s701_s14  ;;  %p1197_p1 = scmp.ne.s32.totalorder %s1188_s7, 0 }
  0x55   : > { %s951_s25 = smov [#allocation9]  }
  0x56   : > { %v346_v5 = vmul.f32 %v715_v3, %v704_v2  ;;  %v347_v7 = vmul.f32 %v716_v4, %v704_v2  ;;  %v284_v2 = vld [vmem:[%s1182_s4] sm:$0xff]  ;;  %s874_s26 = sshll.u32 %s951_s25, 4  ;;  %s875_s26 = int_to_ptr.vmem [resolvable:$false] %s874_s26 }
  0x57   : > { %s876_s11 = scalar_lea.vmem %s875_s26, 256 }
  0x58   : > { %358 = vrot.lane.b32.xlu1 %v346_v5, %s946_s15  ;;  %350 = vrot.lane.b32.xlu0 %v346_v5, %s947_s16 }
  0x5c   : > { %360 = vrot.lane.b32.xlu1 %v347_v7, %s946_s15  ;;  %352 = vrot.lane.b32.xlu0 %v347_v7, %s947_s16  ;;  %s612_s15 = sshll.u32 %s270_s12, 4  ;;  %s1137_s15 = int_to_ptr.vmem [resolvable:$true] %s612_s15 }
  0x5d   : > { %s870_s20 = scalar_lea.vmem %s1137_s15, 128  ;;  %p877_p4 = scmp.lt.s32.totalorder %s1137_s15, %s875_s26 }
  0x5e   : > { %p871_p12 = scmp.ne.s32.totalorder %s1137_s15, %s870_s20  ;;  %p878_p7 = scmp.lt.s32.totalorder %s876_s11, %s870_s20 }
  0x60   : > { %368 = vrot.lane.b32.xlu1 %v347_v7, %s948_s17  ;;  %366 = vrot.lane.b32.xlu0 %v346_v5, %s948_s17  ;;  %p872_p2 = pnand %p871_p12, %p1197_p1  ;;  %p879_p8 = por %p878_p7, %p877_p4 }
  0x62   : > { %p873_p3 = pneg %p872_p2 }
  0x64   : > { %293 = vperm.xlu1 %805, %v281_v8   ;;  %288 = vperm.xlu0 %804, %v280_v9   ;;  %v285_v9 = vld [vmem:[%s1183_s5] sm:$0xff]  ;;  %p880_p11 = pnand %p879_p8, %p873_p3 }
  0xca   : > { %v359_v11 = vpop.permute.xlu1 %358  ;;  %v351_v12 = vpop.permute.xlu0 %350 }
  0xcb   : > { %v356_v13 = vadd.f32 %v351_v12, %v346_v5 }
  0xcd   : > { %v364_v18 = vadd.f32 %v359_v11, %v356_v13 }
  0xce   : > { %v361_v14 = vpop.permute.xlu1 %360  ;;  %v353_v15 = vpop.permute.xlu0 %352 }
  0xcf   : > { %v357_v16 = vadd.f32 %v353_v15, %v347_v7 }
  0xd1   : > { %v365_v17 = vadd.f32 %v361_v14, %v357_v16 }
  0xd2   : > { %v369_v19 = vpop.permute.xlu1 %368  ;;  %v367_v20 = vpop.permute.xlu0 %366 }
  0xd3   : > { %v373_v21 = vadd.f32 %v369_v19, %v365_v17  ;;  %v372_v22 = vadd.f32 %v367_v20, %v364_v18 }
  0xd5   : > { %376 = vst.msk [vmem:[#allocation2 + $0x8] sm:$0xff] %vm374_vm1, %v373_v21  ;;  %375 = vst.msk [vmem:[#allocation2] sm:$0xff] %vm374_vm1, %v372_v22 }
  0xdc   : > { %v377_v23 = vld [vmem:[#allocation2] sm:$0xff]  ;;  %v378_v24 = vld [vmem:[#allocation2 + $0x8] sm:$0xff] }
  0xdd   : > { %v735_v25 = vpack.c.bf16 %v378_v24, %v377_v23 }
  0xdf   : > { %736 = vmatpush3.bf16.msra.mxu0 %v735_v25 }
  0xe2   : > { %727 = vmatmul.mubr.msk.f32.vlgmr.msra.gmra.mrb[0].mxu0 %vm379_vm2, %v283_v26 }
  0xe3   : > { %v294_v27 = vpop.permute.xlu1 %293  ;;  %v289_v28 = vpop.permute.xlu0 %288 }
  0xe4   : > { %v297_v29 = vmul.f32 %v716_v4, %v294_v27  ;;  %v296_v30 = vmul.f32 %v715_v3, %v289_v28 }
  0xe6   : > { %v300_v31 = vsel %vm298_vm3, %v297_v29, 0.0  ;;  %v299_v32 = vsel %vm298_vm3, %v296_v30, 0.0 }
  0xe7   : > { %v301_v33 = vadd.f32 %v300_v31, %v299_v32 }
  0xe9   : > { %v302_v34 = vrot.slane %v301_v33, 4 }
  0xeb   : > { %v303_v35 = vadd.f32 %v302_v34, %v301_v33 }
  0xed   : > { %v304_v36 = vrot.slane %v303_v35, 2 }
  0xef   : > { %v305_v37 = vadd.f32 %v304_v36, %v303_v35 }
  0xf1   : > { %v306_v38 = vrot.slane %v305_v37, 1 }
  0xf3   : > { %v307_v39 = vadd.f32 %v306_v38, %v305_v37 }
  0xf5   : > { %308 = vxpose.xlu1.b32.start.end [1/1] (short) (narrow) %v307_v39, 32 }
 0x175   : > { %v324_v40 = vpop.trf.xlu1 }
 0x176   : > { %455 = vperm.xlu0 %804, %v324_v40  }
 0x179   : > { %v325_v41 = vpop.trf.xlu1 }
 0x17a   : > { %465 = vperm.xlu0 %804, %v325_v41  }
 0x17d   : > { %v326_v42 = vpop.trf.xlu1 }
 0x17e   : > { %476 = vperm.xlu0 %804, %v326_v42  }
 0x181   : > { %v327_v43 = vpop.trf.xlu1 }
 0x182   : > { %487 = vperm.xlu0 %804, %v327_v43  }
 0x1b5   : > { %v449_v44 = vpop.f32.mrb[0].mxu0 }
 0x1b6   : > { %v728_v45 = vpop.f32.mrb[1].mxu0  ;;  %v471_v52 = vrot.slane %v449_v44, %v470_v48  ;;  %v461_v54 = vrot.slane %v449_v44, %v460_v50  ;;  %v482_v55 = vrot.slane %v449_v44, %v481_v51  ;;  %v493_v62 = vrot.slane %v449_v44, %v492_v57 }
 0x1f5   : > { %v456_v49 = vpop.permute.xlu0 %455 }
 0x1f6   : > { %v462_v59 = vmul.f32 %v461_v54, %v456_v49 }
 0x1f9   : > { %v466_v53 = vpop.permute.xlu0 %465 }
 0x1fa   : > { %v472_v56 = vmul.f32 %v471_v52, %v466_v53 }
 0x1fc   : > { %v473_v61 = vadd.f32 %v472_v56, %v462_v59 }
 0x1fd   : > { %v477_v58 = vpop.permute.xlu0 %476 }
 0x1fe   : > { %v483_v60 = vmul.f32 %v482_v55, %v477_v58 }
 0x200   : > { %v484_v0 = vadd.f32 %v483_v60, %v473_v61 }
 0x201   : > { %v488_v63 = vpop.permute.xlu0 %487 }
 0x202   : > { %v494_v1 = vmul.f32 %v493_v62, %v488_v63 }
 0x204   : > { %v495_v3 = vadd.f32 %v494_v1, %v484_v0 }
 0x206   : > { %v496_v4 = vadd.f32 %v495_v3, %v284_v2 }
 0x208   : > { %v706_v5 = vmul.f32 -1.442695, %v496_v4 }
 0x20a   : > { %806 = vpow2.f32 %v706_v5 }
 0x214   : > { %v807_v6 = vpop.eup %806 }
 0x215   : > { %v500_v7 = vadd.f32 1.0, %v807_v6 }
 0x217   : > { %808 = vrcp.f32 %v500_v7 }
 0x221   : > { %v809_v8 = vpop.eup %808 }
 0x222   : > { %503 = vst.msk [vmem:[#allocation3] sm:$0xff] %vm374_vm1, %v809_v8 }
 0x229   : > { %v504_v10 = vld [vmem:[#allocation3] sm:$0xff] }
 0x22a   : > { %730 = vmatpush3.msra.mxu1 %v504_v10 }
 0x22b   : > { %732 = vmatmul.mubr.msk.f32.vlgmr.msra.gmra.mrb[0].mxu1 %vm374_vm1, %v285_v9 }
 0x2fe   : > { %v574_v11 = vpop.f32.mrb[0].mxu1 }
 0x2ff   : > { %v578_v12 = vsel %vm374_vm1, %v574_v11, -inf  ;;  %v733_v13 = vpop.f32.mrb[1].mxu1 }
 0x300   : > { %v579_v14 = vrot.slane %v578_v12, 4 }
 0x302   : > { %v580_v15 = vmax.f32 %v578_v12, %v579_v14 }
 0x304   : > { %v581_v16 = vrot.slane %v580_v15, 2 }
 0x306   : > { %v582_v17 = vmax.f32 %v580_v15, %v581_v16 }
 0x308   : > { %v583_v18 = vrot.slane %v582_v17, 1 }
 0x30a   : > { %v584_v19 = vmax.f32 %v582_v17, %v583_v18 }
 0x30c   : > { %v585_v20 = vsub.f32 %v574_v11, %v584_v19 }
 0x30e   : > { %v586_v21 = vmul.f32 1.442695, %v585_v20 }
 0x310   : > { %810 = vpow2.f32 %v586_v21 }
 0x31a   : > { %v811_v22 = vpop.eup %810 }
 0x31b   : > { %v588_v23 = vsel %vm374_vm1, %v811_v22, 0.0 }
 0x31c   : > { %v589_v24 = vrot.slane %v588_v23, 4 }
 0x31e   : > { %v590_v25 = vadd.f32 %v589_v24, %v588_v23 }
 0x320   : > { %v591_v26 = vrot.slane %v590_v25, 2 }
 0x322   : > { %v592_v27 = vadd.f32 %v591_v26, %v590_v25 }
 0x324   : > { %v593_v28 = vrot.slane %v592_v27, 1 }
 0x326   : > { %v594_v29 = vadd.f32 %v593_v28, %v592_v27 }
 0x328   : > { %812 = vrcp.f32 %v594_v29 }
 0x332   : > { %v813_v30 = vpop.eup %812 }
 0x333   : > { %v596_v31 = vmul.f32 %v813_v30, %v811_v22 }
 0x335   : > { %597 = vst.msk [vmem:[%s270_s12] sm:$0xff] %vm374_vm1, %v596_v31 }
 0x336   : > { %883 = shalt.err (!%p880_p11)
}
 0x337   : > { %s884_s28 = scalar_lea.hbm %s1135_s18, 128  ;;  %s888_s13 = scalar_lea.hbm %s1184_s6, 256 }
 0x338   : > { %p885_p13 = scmp.ne.s32.totalorder %s1135_s18, %s884_s28  ;;  %p889_p5 = scmp.lt.u32.totalorder %s1135_s18, %s1184_s6 }
 0x339   : > { %p890_p9 = scmp.lt.u32.totalorder %s888_s13, %s884_s28  ;;  %p892_p12 = scmp.lt.u32.totalorder %s884_s28, %s1135_s18 }
 0x33a   : > { %p886_p6 = pnand %p885_p13, %p1197_p1 }
 0x33b   : > { %p891_p10 = por %p890_p9, %p889_p5 }
 0x33c   : > { %p887_p0 = pneg %p886_p6 }
 0x33d   : > { %p893_p2 = por %p892_p12, %p891_p10 }
 0x33f   : > { %p894_p3 = pnand %p893_p2, %p887_p0 }
 0x341   : > { %897 = shalt.err (!%p894_p3)
}
 0x342   : > { %745 = dma.vmem_to_hbm [thread:$0]  (%p1197_p1), %s1137_s15, 128, %s1135_s18, %s599_s19  }
 0x343 PF: > { %p762_p4 = scmp.ge.s32.totalorder %s940_s24, 2  ;;  %s624_s12 = sand.u32 1, %s928_s21  }
 0x344   : > { %p1198_p7 = scmp.ne.s32.totalorder %s1189_s8, 0  ;;  %s625_s16 = scalar_lea.sflag [#allocation6], %s624_s12 }
 0x346   : > { %p755_p8 = pnand %p762_p4, %p1198_p7 }
 0x348   : > { %923 = dma.done.wait (!%p755_p8), %s625_s16, 128  }
 0x349   : > { %925 = vsyncadd (!%p755_p8), %s625_s16, 4294967168  ;;  %p18_p11 = scmp.ge.s32.totalorder %s1012_s27, 4   ;;  %s1199_s21 = smov %s932_s22 }
 0x34a   : > { %s1200_s22 = smov %s936_s23  ;;  %s1201_s23 = smov %s1023_s30 }
 0x34b   : > { %s1202_s24 = smov %s1012_s27  ;;  %20 = sbr.rel (!%p18_p11) target bundleno = 5 (0x5), region = 88 }
 0x352   :  { %630 = vsyncpa [#allocation5], 1 }
 0x353   :  { %632 = vsyncpa [#allocation5 + $0x1], 1 }
 0x354   :  { %633 = vsyncpa [#allocation8], 1 }
 0x355   :  { %634 = vsyncpa [#allocation6], 1 }
 0x356   :  { %636 = vsyncpa [#allocation6 + $0x1], 1 }

</bundles_post_ra>
